<compile_context>
chip_gen: v5e
topology: v5e:2x2
jax: 0.10.0
libtpu: 0.0.40
codegen_flags: <defaults>
</compile_context>

<pallas_src>
import numpy as np
import jax
import jax.numpy as jnp
from jax import lax
from jax.experimental import pallas as pl
from jax.experimental.pallas import tpu as pltpu

KERNEL_SIZE = 31
CHANNELS = 3  # Conv2d(3, 3, ks, groups=3, bias=False)


def make_blur_weight(kernel_size=KERNEL_SIZE, std=3.0):
    """Reproduces Blurkernel.weights_init(blur_type='gaussian').

    The reference builds a gaussian kernel but immediately overwrites it with the
    normalized all-ones (box) kernel; that box kernel is what `self.k` holds.
    NOTE: the PyTorch code's `f.data.copy_(k)` copies a leftover loop integer (a bug
    in the original); we use the intended normalized kernel for all 3 depthwise
    filters (documented intentional divergence).
    """
    ker2d = jnp.ones((kernel_size, kernel_size), jnp.float32)
    ker2d = ker2d / ker2d.sum()
    return jnp.broadcast_to(ker2d, (CHANNELS, kernel_size, kernel_size))


def _separable_factors(k2d, rel_tol=1e-6):
    """Exact SVD factorization k2d[i,j] = sum_r cols[r,i] * rows[r,j].

    The module's box (and gaussian) kernels are rank-1, so R == 1 and the 961-tap
    2-D conv becomes one row pass + one column pass.  Non-separable kernels set via
    update_weights still evaluate exactly, with R > 1 terms (statically unrolled).
    """
    u, s, vt = np.linalg.svd(np.asarray(k2d, np.float64))
    if s[0] <= 0.0:
        keep = np.zeros(s.shape, bool)
        keep[0] = True
    else:
        keep = s > s[0] * rel_tol
    cols = (u[:, keep] * s[keep]).T.astype(np.float32)  # (R, ks)
    rows = vt[keep].astype(np.float32)                  # (R, ks)
    return cols, rows


def _reflect_conv_operator(length, taps):
    """(length, length) operator M such that M @ v == 1-D VALID cross-correlation
    of the reflection-padded (edge not repeated) signal v with `taps`."""
    ks = len(taps)
    pad = ks // 2
    lp = length + 2 * pad
    src = np.abs(np.arange(lp) - pad)
    src = np.where(src >= length, 2 * (length - 1) - src, src)
    sel = np.zeros((lp, length), np.float32)
    sel[np.arange(lp), src] = 1.0
    toep = np.zeros((length, lp), np.float32)
    for i in range(ks):
        toep[np.arange(length), np.arange(length) + i] = taps[i]
    return (toep @ sel).astype(np.float32)
    # TODO(synk): for large H/W replace these dense O(L^2) operators with
    # block-banded operators + a K-tiled grid (31-tap support only touches <=2
    # adjacent 128/256-lane blocks), which also makes 2k x 2k fit v7x VMEM.


def _vmem_budget():
    """Generation-aware (vmem_limit_bytes, per-block x-tile byte cap)."""
    vmem_cap = None
    try:
        vmem_cap = int(pltpu.get_tpu_info().vmem_capacity_bytes)
    except Exception:
        pass
    if not vmem_cap:
        try:
            kind = jax.devices()[0].device_kind.lower()
            vmem_cap = (64 << 20) if "v7" in kind else (128 << 20)
        except Exception:
            vmem_cap = 64 << 20
    vmem_limit = min(vmem_cap * 3 // 4, 96 << 20)   # 96 MiB on v5e/v6e, 48 MiB on v7x
    x_block_cap = max(2 << 20, vmem_limit // 12)    # ~8 MiB / ~4 MiB x blocks
    return vmem_limit, x_block_cap


def _pick_batch_tile(b, h, w, max_block_bytes):
    per_img = h * w * 4  # f32
    bt = max(1, min(b, max_block_bytes // per_img))
    # Keep >= 2 grid steps so the "parallel" batch axis can be megacore-sharded
    # across v7x's 2 TensorCores instead of leaving one idle.
    if bt >= b and b >= 2:
        bt = (b + 1) // 2
    return max(1, bt)


def _sep_blur_kernel(mhT_ref, rwT_ref, x_ref, o_ref):
    # mhT_ref: (R, H, H) transposed column-pass operators (reflect pad + 1-D conv over H)
    # rwT_ref: (R, W, W) transposed row-pass operators   (reflect pad + 1-D conv over W)
    # x_ref:   (bt, H, W) block of images (N*C flattened onto one batch axis)
    bt, h, w = x_ref.shape
    rank = mhT_ref.shape[0]
    x = x_ref[...].astype(jnp.float32)
    # TODO(synk): on v6e/v7x, bf16 operands (f32 accumulation) would ~3x the MXU
    # throughput but needs the 1e-4 accuracy budget re-validated; kept f32 here.

    out = None
    for r in range(rank):  # static unroll; rank == 1 for the box/gaussian kernels
        # Row pass as one flat MXU matmul: (bt*H, W) @ (W, W).
        t = jnp.dot(x.reshape(bt * h, w), rwT_ref[r],
                    preferred_element_type=jnp.float32).reshape(bt, h, w)
        # Column pass: XLU transpose of the (H, W) tiles, flat matmul (bt*W, H) @ (H, H),
        # transpose back.  No operator broadcast, no per-image tiny matmuls.
        tT = jnp.swapaxes(t, 1, 2)                                   # (bt, W, H)
        yT = jnp.dot(tT.reshape(bt * w, h), mhT_ref[r],
                     preferred_element_type=jnp.float32).reshape(bt, w, h)
        y = jnp.swapaxes(yT, 1, 2)                                   # (bt, H, W)
        out = y if out is None else out + y
    o_ref[...] = out.astype(o_ref.dtype)


def blurkernel_forward(x, weight, *, kernel_size=KERNEL_SIZE):
    """x: (N, 3, H, W) float32; weight: (3, ks, ks). Returns (N, 3, H, W)."""
    n, c, h, w = x.shape
    assert c == CHANNELS
    pad = kernel_size // 2
    if h <= pad or w <= pad:
        raise ValueError(
            f"ReflectionPad2d({pad}) requires H > {pad} and W > {pad}, got H={h}, W={w}")

    # --- weight preparation (host-side, once; analogous to module init) ---
    w_np = np.asarray(weight, dtype=np.float32).reshape(c, kernel_size, kernel_size)
    if not all(np.allclose(w_np[0], w_np[i]) for i in range(1, c)):
        # TODO(synk): per-channel-distinct depthwise filters would need a channel grid
        # axis with per-channel operators; the reference module always copies one
        # kernel to all 3 filters, so this path is not implemented.
        raise NotImplementedError("Blurkernel copies one kernel to all 3 filters")
    cols, rows = _separable_factors(w_np[0])                               # (R, ks)
    mhT = np.stack([_reflect_conv_operator(h, t).T for t in cols])         # (R, H, H)
    rwT = np.stack([_reflect_conv_operator(w, t).T for t in rows])         # (R, W, W)

    # --- flatten (N, C) onto one batch axis, tile it (ragged -> pad) ---
    # TODO(synk): production image sizes should keep W a multiple of 128 (lane-dense
    # stores); for tiny W, packing batch into the lane axis would help — not needed
    # for correctness here.
    b = n * c
    x3 = x.reshape(b, h, w)
    vmem_limit, x_block_cap = _vmem_budget()
    bt = _pick_batch_tile(b, h, w, x_block_cap)
    bpad = ((b + bt - 1) // bt) * bt
    if bpad != b:
        x3 = jnp.pad(x3, ((0, bpad - b), (0, 0), (0, 0)))
    grid = (bpad // bt,)

    mhT_d = jnp.asarray(mhT)
    rwT_d = jnp.asarray(rwT)

    def _build(op_pipeline_mode):
        op_kw = {} if op_pipeline_mode is None else {"pipeline_mode": op_pipeline_mode}
        return pl.pallas_call(
            _sep_blur_kernel,
            out_shape=jax.ShapeDtypeStruct((bpad, h, w), x.dtype),
            grid_spec=pltpu.PrefetchScalarGridSpec(
                num_scalar_prefetch=0,
                grid=grid,
                in_specs=[
                    pl.BlockSpec(mhT.shape, lambda i: (0, 0, 0), **op_kw),
                    pl.BlockSpec(rwT.shape, lambda i: (0, 0, 0), **op_kw),
                    pl.BlockSpec((bt, h, w), lambda i: (i, 0, 0)),
                ],
                out_specs=pl.BlockSpec((bt, h, w), lambda i: (i, 0, 0)),
            ),
            compiler_params=pltpu.CompilerParams(
                dimension_semantics=("parallel",),
                vmem_limit_bytes=vmem_limit,
            ),
        )

    try:
        # Operators are grid-invariant -> single-buffer them (saves 2x operator VMEM).
        out3 = _build(pl.Buffered(1))(mhT_d, rwT_d, x3)
    except Exception:
        # Fallback if this jax build rejects single-buffered inputs.
        out3 = _build(None)(mhT_d, rwT_d, x3)

    if bpad != b:
        out3 = out3[:b]
    return out3.reshape(n, c, h, w)


def _reference_forward(x, weight, *, kernel_size=KERNEL_SIZE):
    """Plain-JAX reference: ReflectionPad2d + grouped Conv2d (groups=C, no bias)."""
    pad = kernel_size // 2
    x_pad = jnp.pad(x, ((0, 0), (0, 0), (pad, pad), (pad, pad)), mode="reflect")
    c = x.shape[1]
    return lax.conv_general_dilated(
        x_pad, weight.reshape(c, 1, kernel_size, kernel_size),
        window_strides=(1, 1), padding="VALID",
        dimension_numbers=("NCHW", "OIHW", "NCHW"),
        feature_group_count=c)


if __name__ == "__main__":
    key = jax.random.PRNGKey(0)
    N, C, H, W = 2, 3, 16, 16  # H, W must exceed kernel_size // 2 for reflect pad
    x = jax.random.normal(key, (N, C, H, W), dtype=jnp.float32)
    weight = make_blur_weight()

    out = jax.block_until_ready(blurkernel_forward(x, weight))
    ref = jax.block_until_ready(_reference_forward(x, weight))

    assert out.shape == (N, C, H, W)
    assert out.dtype == jnp.float32
    max_err = float(jnp.max(jnp.abs(out - ref)))
    assert jnp.allclose(out, ref, atol=1e-4, rtol=1e-4), max_err
    print("KERNEL_OK")
</pallas_src>

<mosaic_0001>
module attributes {stable_mosaic.version = 11 : i64} {
  func.func @_sep_blur_kernel(%arg0: i32, %arg1: memref<1x16x16xf32, #tpu.memory_space<vmem>>, %arg2: memref<1x16x16xf32, #tpu.memory_space<vmem>>, %arg3: memref<3x16x16xf32, #tpu.memory_space<vmem>>, %arg4: memref<3x16x16xf32, #tpu.memory_space<vmem>>) attributes {dimension_semantics = [#tpu.dimension_semantics<parallel>], iteration_bounds = array<i64: 2>, scalar_prefetch = 0 : i64, scratch_operands = 0 : i64, tpu.core_type = #tpu.core_type<tc>, window_params = [{pipeline_mode = #tpu.pipeline_mode<synchronous>, transform_indices = @transform_0, window_bounds = array<i64: 1, 16, 16>}, {pipeline_mode = #tpu.pipeline_mode<synchronous>, transform_indices = @transform_1, window_bounds = array<i64: 1, 16, 16>}, {transform_indices = @transform_2, window_bounds = array<i64: 3, 16, 16>}, {transform_indices = @transform_3, window_bounds = array<i64: 3, 16, 16>}]} {
    %c0 = arith.constant 0 : index
    %c0_0 = arith.constant 0 : index
    %c0_1 = arith.constant 0 : index
    %0 = vector.load %arg3[%c0, %c0_0, %c0_1] : memref<3x16x16xf32, #tpu.memory_space<vmem>>, vector<3x16x16xf32>
    %1 = vector.shape_cast %0 : vector<3x16x16xf32> to vector<48x16xf32>
    %c0_2 = arith.constant 0 : index
    %c0_3 = arith.constant 0 : index
    %c0_4 = arith.constant 0 : index
    %2 = vector.load %arg2[%c0_2, %c0_3, %c0_4] : memref<1x16x16xf32, #tpu.memory_space<vmem>>, vector<1x16x16xf32>
    %3 = vector.shape_cast %2 : vector<1x16x16xf32> to vector<16x16xf32>
    %cst = arith.constant dense<0.000000e+00> : vector<48x16xf32>
    %4 = tpu.matmul %1, %3, %cst {dimension_numbers = #tpu.dot_dimension_numbers<[1], [0], [0], [1], [0, 0, 1, 1], [], []>} : vector<48x16xf32>, vector<16x16xf32>, vector<48x16xf32> -> vector<48x16xf32>
    %5 = vector.shape_cast %4 : vector<48x16xf32> to vector<3x16x16xf32>
    %6 = tpu.transpose %5, [0, 2, 1] : vector<3x16x16xf32> -> vector<3x16x16xf32>
    %7 = vector.shape_cast %6 : vector<3x16x16xf32> to vector<48x16xf32>
    %c0_5 = arith.constant 0 : index
    %c0_6 = arith.constant 0 : index
    %c0_7 = arith.constant 0 : index
    %8 = vector.load %arg1[%c0_5, %c0_6, %c0_7] : memref<1x16x16xf32, #tpu.memory_space<vmem>>, vector<1x16x16xf32>
    %9 = vector.shape_cast %8 : vector<1x16x16xf32> to vector<16x16xf32>
    %cst_8 = arith.constant dense<0.000000e+00> : vector<48x16xf32>
    %10 = tpu.matmul %7, %9, %cst_8 {dimension_numbers = #tpu.dot_dimension_numbers<[1], [0], [0], [1], [0, 0, 1, 1], [], []>} : vector<48x16xf32>, vector<16x16xf32>, vector<48x16xf32> -> vector<48x16xf32>
    %11 = vector.shape_cast %10 : vector<48x16xf32> to vector<3x16x16xf32>
    %12 = tpu.transpose %11, [0, 2, 1] : vector<3x16x16xf32> -> vector<3x16x16xf32>
    %c0_9 = arith.constant 0 : index
    %c0_10 = arith.constant 0 : index
    %c0_11 = arith.constant 0 : index
    %13 = vector.load %arg4[%c0_9, %c0_10, %c0_11] : memref<3x16x16xf32, #tpu.memory_space<vmem>>, vector<3x16x16xf32>
    tpu.vector_store %arg4[%c0_9, %c0_10, %c0_11], %12 {strides = array<i32>} : memref<3x16x16xf32, #tpu.memory_space<vmem>>, vector<3x16x16xf32>,
    return
  }
  func.func @transform_0(%arg0: i32) -> (i32, i32, i32) {
    %c0_i32 = arith.constant 0 : i32
    %c0_i32_0 = arith.constant 0 : i32
    %c0_i32_1 = arith.constant 0 : i32
    %c0_i32_2 = arith.constant 0 : i32
    return %c0_i32, %c0_i32_0, %c0_i32_1 : i32, i32, i32
  }
  func.func @transform_1(%arg0: i32) -> (i32, i32, i32) {
    %c0_i32 = arith.constant 0 : i32
    %c0_i32_0 = arith.constant 0 : i32
    %c0_i32_1 = arith.constant 0 : i32
    %c0_i32_2 = arith.constant 0 : i32
    return %c0_i32, %c0_i32_0, %c0_i32_1 : i32, i32, i32
  }
  func.func @transform_2(%arg0: i32) -> (i32, i32, i32) {
    %c0_i32 = arith.constant 0 : i32
    %c0_i32_0 = arith.constant 0 : i32
    %c0_i32_1 = arith.constant 0 : i32
    return %arg0, %c0_i32, %c0_i32_0 : i32, i32, i32
  }
  func.func @transform_3(%arg0: i32) -> (i32, i32, i32) {
    %c0_i32 = arith.constant 0 : i32
    %c0_i32_0 = arith.constant 0 : i32
    %c0_i32_1 = arith.constant 0 : i32
    return %arg0, %c0_i32, %c0_i32_0 : i32, i32, i32
  }
}

module attributes {stable_mosaic.version = 11 : i64} {
  func.func @_sep_blur_kernel(%arg0: i32, %arg1: memref<1x16x16xf32, #tpu.memory_space<vmem>>, %arg2: memref<1x16x16xf32, #tpu.memory_space<vmem>>, %arg3: memref<3x16x16xf32, #tpu.memory_space<vmem>>, %arg4: memref<3x16x16xf32, #tpu.memory_space<vmem>>) attributes {dimension_semantics = [#tpu.dimension_semantics<parallel>], iteration_bounds = array<i64: 2>, scalar_prefetch = 0 : i64, scratch_operands = 0 : i64, tpu.core_type = #tpu.core_type<tc>, window_params = [{pipeline_mode = #tpu.pipeline_mode<synchronous>, transform_indices = @transform_0, window_bounds = array<i64: 1, 16, 16>}, {pipeline_mode = #tpu.pipeline_mode<synchronous>, transform_indices = @transform_1, window_bounds = array<i64: 1, 16, 16>}, {transform_indices = @transform_2, window_bounds = array<i64: 3, 16, 16>}, {transform_indices = @transform_3, window_bounds = array<i64: 3, 16, 16>}]} {
    %c0 = arith.constant 0 : index
    %c0_0 = arith.constant 0 : index
    %c0_1 = arith.constant 0 : index
    %0 = vector.load %arg3[%c0, %c0_0, %c0_1] : memref<3x16x16xf32, #tpu.memory_space<vmem>>, vector<3x16x16xf32>
    %1 = vector.shape_cast %0 : vector<3x16x16xf32> to vector<48x16xf32>
    %c0_2 = arith.constant 0 : index
    %c0_3 = arith.constant 0 : index
    %c0_4 = arith.constant 0 : index
    %2 = vector.load %arg2[%c0_2, %c0_3, %c0_4] : memref<1x16x16xf32, #tpu.memory_space<vmem>>, vector<1x16x16xf32>
    %3 = vector.shape_cast %2 : vector<1x16x16xf32> to vector<16x16xf32>
    %cst = arith.constant dense<0.000000e+00> : vector<48x16xf32>
    %4 = tpu.matmul %1, %3, %cst {dimension_numbers = #tpu.dot_dimension_numbers<[1], [0], [0], [1], [0, 0, 1, 1], [], []>} : vector<48x16xf32>, vector<16x16xf32>, vector<48x16xf32> -> vector<48x16xf32>
    %5 = vector.shape_cast %4 : vector<48x16xf32> to vector<3x16x16xf32>
    %6 = tpu.transpose %5, [0, 2, 1] : vector<3x16x16xf32> -> vector<3x16x16xf32>
    %7 = vector.shape_cast %6 : vector<3x16x16xf32> to vector<48x16xf32>
    %c0_5 = arith.constant 0 : index
    %c0_6 = arith.constant 0 : index
    %c0_7 = arith.constant 0 : index
    %8 = vector.load %arg1[%c0_5, %c0_6, %c0_7] : memref<1x16x16xf32, #tpu.memory_space<vmem>>, vector<1x16x16xf32>
    %9 = vector.shape_cast %8 : vector<1x16x16xf32> to vector<16x16xf32>
    %cst_8 = arith.constant dense<0.000000e+00> : vector<48x16xf32>
    %10 = tpu.matmul %7, %9, %cst_8 {dimension_numbers = #tpu.dot_dimension_numbers<[1], [0], [0], [1], [0, 0, 1, 1], [], []>} : vector<48x16xf32>, vector<16x16xf32>, vector<48x16xf32> -> vector<48x16xf32>
    %11 = vector.shape_cast %10 : vector<48x16xf32> to vector<3x16x16xf32>
    %12 = tpu.transpose %11, [0, 2, 1] : vector<3x16x16xf32> -> vector<3x16x16xf32>
    %c0_9 = arith.constant 0 : index
    %c0_10 = arith.constant 0 : index
    %c0_11 = arith.constant 0 : index
    %13 = vector.load %arg4[%c0_9, %c0_10, %c0_11] : memref<3x16x16xf32, #tpu.memory_space<vmem>>, vector<3x16x16xf32>
    tpu.vector_store %arg4[%c0_9, %c0_10, %c0_11], %12 {strides = array<i32>} : memref<3x16x16xf32, #tpu.memory_space<vmem>>, vector<3x16x16xf32>,
    return
  }
  func.func @transform_0(%arg0: i32) -> (i32, i32, i32) {
    %c0_i32 = arith.constant 0 : i32
    %c0_i32_0 = arith.constant 0 : i32
    %c0_i32_1 = arith.constant 0 : i32
    %c0_i32_2 = arith.constant 0 : i32
    return %c0_i32, %c0_i32_0, %c0_i32_1 : i32, i32, i32
  }
  func.func @transform_1(%arg0: i32) -> (i32, i32, i32) {
    %c0_i32 = arith.constant 0 : i32
    %c0_i32_0 = arith.constant 0 : i32
    %c0_i32_1 = arith.constant 0 : i32
    %c0_i32_2 = arith.constant 0 : i32
    return %c0_i32, %c0_i32_0, %c0_i32_1 : i32, i32, i32
  }
  func.func @transform_2(%arg0: i32) -> (i32, i32, i32) {
    %c0_i32 = arith.constant 0 : i32
    %c0_i32_0 = arith.constant 0 : i32
    %c0_i32_1 = arith.constant 0 : i32
    return %arg0, %c0_i32, %c0_i32_0 : i32, i32, i32
  }
  func.func @transform_3(%arg0: i32) -> (i32, i32, i32) {
    %c0_i32 = arith.constant 0 : i32
    %c0_i32_0 = arith.constant 0 : i32
    %c0_i32_1 = arith.constant 0 : i32
    return %arg0, %c0_i32, %c0_i32_0 : i32, i32, i32
  }
}

</mosaic_0001>

<bundles_post_ra>
// kernel: tpu_custom_call.1
= control target key start
LH: loop header
LB: loop body
LE: loop exit
PB: predicated region body
PF: predicated region fallthrough
CT: control target
= control target key end

     0   :  { %8 = vsyncpa [#allocation3], 0  ;;  %s1128_s0 = inlined_call_operand.hbm [shape: f32[1,16,16], index: 0, kind: input, shape index: {}]   ;;  %s1129_s1 = inlined_call_operand.hbm [shape: f32[1,16,16], index: 1, kind: input, shape index: {}]   ;;  %s1130_s2 = inlined_call_operand.hbm [shape: f32[6,16,16], index: 2, kind: input, shape index: {}]   ;;  %s1131_s3 = inlined_call_operand.hbm [shape: f32[6,16,16], index: 3, kind: output, shape index: {}]  }
   0x1   :  { %9 = vsyncpa [#allocation6], 0 }
   0x2   :  { %10 = vsyncpa [#allocation4], 0 }
   0x3   :  { %12 = vsyncpa [#allocation4 + $0x1], 0  ;;  %s951_s12 = smov 0   ;;  %s953_s13 = smov 0  }
   0x4   :  { %s955_s14 = smov 0   ;;  %s957_s15 = smov 0  }
   0x5 LB: > { %s972_s16 = sadd.s32 4294967295, %s923_s15   ;;  %s649_s17 = sadd.s32 4294967294, %s923_s15   ;;  %s923_s15 = sphi %s957_s15, %s1145_s15   ;;  %s919_s14 = sphi %s955_s14, %s1144_s14   ;;  %s915_s13 = sphi %s953_s13, %s1143_s13   ;;  %s911_s12 = sphi %s951_s12, %s1142_s12  }
   0x6   : > { %p80_p0 = scmp.ne.s32.totalorder %s915_s13, %s911_s12  ;;  %p81_p1 = scmp.eq.s32.totalorder %s972_s16, 0 }
   0x7   : > { %p104_p2 = scmp.eq.s32.totalorder %s972_s16, 1  ;;  %p110_p3 = scmp.eq.s32.totalorder %s649_s17, 1 }
   0x8   : > { %p981_p4 = por %p81_p1, %p80_p0  ;;  %p650_p5 = scmp.ge.s32.totalorder %s923_s15, 1 }
   0x9   : > { %p986_p6 = por %p110_p3, %p80_p0  ;;  %p117_p7 = scmp.lt.s32.totalorder %s923_s15, 3 }
   0xa   : > { %s128_s22 = sshll.u32 %s1128_s0, 4  ;;  %s925_s24 = smov [#allocation2]   ;;  %s129_s22 = int_to_ptr.hbm [resolvable:$true] %s128_s22 }
   0xb   : > { %p994_p8 = pnand %p650_p5, %p117_p7  ;;  %s130_s25 = sshll.u32 %s925_s24, 4  ;;  %s131_s25 = int_to_ptr.vmem [resolvable:$true] %s130_s25 }
   0xc   : > { %s142_s28 = sshll.u32 %s1129_s1, 4  ;;  %s1132_s29 = smov 128   ;;  %s143_s28 = int_to_ptr.hbm [resolvable:$true] %s142_s28 }
   0xd   : > { %p699_p9 = pneg %p994_p8  ;;  %s1133_s30 = smov 8  }
   0xe   : > { %s928_s4 = smov [#allocation5]   ;;  %s1013_s6 = sadd.s32 1, %s923_s15  }
   0xf   : > { %p700_p10 = pnand %p699_p9, %p81_p1  ;;  %s144_s5 = sshll.u32 %s928_s4, 4  ;;  %s145_s5 = int_to_ptr.vmem [resolvable:$true] %s144_s5 }
  0x10   : > { %s67_s7 = sadd.s32 1, %s919_s14  ;;  %s64_s8 = ssub.s32 %s923_s15, %s1013_s6 }
  0x11   : > { %702 = dma.hbm_to_vmem [thread:$0]  (!%p700_p10), %s129_s22, 256, %s131_s25, [#allocation3], %s1132_s29, %s1132_s29, %s1133_s30  }
  0x12   : > { %705 = dma.hbm_to_vmem [thread:$0]  (!%p700_p10), %s143_s28, 256, %s145_s5, [#allocation6], %s1132_s29, %s1132_s29, %s1133_s30  }
  0x13   : > { %p74_p12 = scmp.ne.s32.totalorder %s919_s14, %s915_s13  ;;  %p65_p13 = scmp.eq.s32.totalorder %s64_s8, 0 }
  0x14   : > { %p75_p0 = scmp.eq.s32.totalorder %s923_s15, 0  ;;  %p716_p5 = scmp.lt.s32.totalorder %s923_s15, 2 }
  0x15   : > { %p1023_p3 = por %p104_p2, %p74_p12  ;;  %s158_s11 = sand.u32 1, %s923_s15  }
  0x16   : > { %s1029_s10 = scalar_select %p65_p13, %s919_s14, %s67_s7  }
  0x17   : > { %p76_p7 = por %p75_p0, %p74_p12  ;;  %s160_s17 = sand.u32 1, %s919_s14  }
  0x18   : > { %s685_s20 = smul.u32 48, %s160_s17  ;;  %s159_s5 = scalar_lea.sflag [#allocation3], %s158_s11 }
  0x19   : > { %p1033_p9 = pnand %p716_p5, %p76_p7  ;;  %s679_s22 = smul.u32 48, %s923_s15 }
  0x1a   : > { %s162_s27 = scalar_lea.vmem [#allocation7], %s685_s20  ;;  %s826_s30 = scalar_lea.hbm %s1130_s2, 96 }
  0x1b   : > { %s168_s26 = scalar_lea.hbm %s1130_s2, %s679_s22  ;;  %s171_s28 = sshll.u32 %s162_s27, 4  ;;  %s172_s28 = int_to_ptr.vmem [resolvable:$true] %s171_s28 }
  0x1c   : > { %s169_s4 = sshll.u32 %s168_s26, 4  ;;  %p823_p10 = pneg %p1033_p9  ;;  %s170_s4 = int_to_ptr.hbm [resolvable:$true] %s169_s4 }
  0x1d   : > { %s819_s7 = sshra.s32 %s170_s4, 4  ;;  %s820_s7 = int_to_ptr.hbm [resolvable:$true] %s819_s7 }
  0x1e   : > { %s821_s8 = scalar_lea.hbm %s820_s7, 48  ;;  %p827_p0 = scmp.lt.s32.totalorder %s820_s7, %s1130_s2 }
  0x1f   : > { %p822_p2 = scmp.ne.s32.totalorder %s820_s7, %s821_s8  ;;  %p828_p5 = scmp.lt.s32.totalorder %s826_s30, %s821_s8 }
  0x21   : > { %p824_p12 = pnand %p823_p10, %p822_p2  ;;  %p829_p7 = por %p828_p5, %p827_p0 }
  0x23   : > { %p825_p13 = pneg %p824_p12 }
  0x25   : > { %p830_p11 = pnand %p829_p7, %p825_p13 }
  0x27   : > { %833 = shalt.err (!%p830_p11)
}
  0x28   : > { %s1139_s11 = smov 8   ;;  %s1140_s20 = smov 128  }
  0x29   : > { %709 = dma.hbm_to_vmem [thread:$0]  (!%p1033_p9), %s170_s4, 768, %s172_s28, %s159_s5, %s1140_s20, %s1140_s20, %s1139_s11  }
  0x2a   : > { %183 = sbr.rel (%p994_p8) target bundleno = 680 (0x2a8), region = 32 }
  0x2f   : > { %894 = dma.done.wait (%p81_p1), [#allocation3], 256  }
  0x30   : > { %896 = vsyncadd (%p81_p1), [#allocation3], 4294967040 }
  0x31   : > { %898 = dma.done.wait (%p81_p1), [#allocation6], 256  }
  0x32   : > { %900 = vsyncadd (%p81_p1), [#allocation6], 4294967040  ;;  %s195_s29 = sand.u32 1, %s972_s16   ;;  %s197_s30 = sand.u32 1, %s915_s13  }
  0x33   : > { %s1068_s23 = smul.u32 48, %s197_s30  ;;  %s196_s21 = scalar_lea.sflag [#allocation3], %s195_s29 }
  0x35   : > { %s199_s25 = scalar_lea.vmem [#allocation7], %s1068_s23 }
  0x36   : > { %902 = dma.done.wait (%p981_p4), %s196_s21, 768  }
  0x37   : > { %904 = vsyncadd (%p981_p4), %s196_s21, 4294966528  ;;  %v232_v0 = vld [vmem:[#allocation5 + $0x8] sm:$0xff]  ;;  %v231_v1 = vld [vmem:[#allocation5] sm:$0xff]  ;;  %vm233_vm0 = vcmask 130048   ;;  %s222_s18 = scalar_lea.vmem [#allocation8], %s1068_s23  ;;  %s680_s26 = smul.u32 48, %s972_s16 }
  0x38   : > { %266 = vmatpush.msra.mxu0 %v232_v0  ;;  %v225_v2 = vld [vmem:[%s199_s25] sm:$0xff]  ;;  %681 = vmatpush.msra.mxu2 %v232_v0  ;;  %v228_v3 = vld [vmem:[%s199_s25 + $0x18] sm:$0xff]  ;;  %v226_v4 = vld [vmem:[%s199_s25 + $0x8] sm:$0xff]  ;;  %s554_s5 = sshll.u32 %s222_s18, 4  ;;  %s541_s16 = scalar_lea.sflag [#allocation4], %s197_s30  ;;  %s555_s5 = int_to_ptr.vmem [resolvable:$true] %s554_s5 }
  0x39   : > { %v229_v5 = vld [vmem:[%s199_s25 + $0x20] sm:$0xff]  ;;  %v227_v6 = vld [vmem:[%s199_s25 + $0x10] sm:$0xff]  ;;  %v230_v7 = vld [vmem:[%s199_s25 + $0x28] sm:$0xff]  ;;  %s553_s4 = scalar_lea.hbm %s1131_s3, %s680_s26  ;;  %s869_s11 = scalar_lea.hbm %s1131_s3, 96 }
  0x3a   : > { %267 = vmatpush.msra.mxu0 %v231_v1  ;;  %682 = vmatpush.msra.mxu2 %v231_v1  ;;  %v384_v8 = vld [vmem:[#allocation2 + $0x8] sm:$0xff]  ;;  %v383_v9 = vld [vmem:[#allocation2] sm:$0xff]  ;;  %s556_s7 = sshll.u32 %s553_s4, 4  ;;  %s557_s7 = int_to_ptr.hbm [resolvable:$true] %s556_s7 }
  0x3b   : > { %659 = vmatmul.msk.f32.vlgmr.msra.gmra.mxu0 %vm233_vm0, %v225_v2  ;;  %662 = vmatmul.msk.f32.vlgmr.msra.gmra.mxu2 %vm233_vm0, %v228_v3  ;;  %s863_s8 = sshra.s32 %s557_s7, 4  ;;  %s864_s8 = int_to_ptr.hbm [resolvable:$true] %s863_s8 }
  0x3c   : > { %417 = vmatpush.msra.mxu1 %v384_v8  ;;  %683 = vmatpush.msra.mxu3 %v384_v8  ;;  %s865_s17 = scalar_lea.hbm %s864_s8, 48  ;;  %p870_p11 = scmp.lt.s32.totalorder %s864_s8, %s1131_s3 }
  0x3d   : > { %p866_p1 = scmp.ne.s32.totalorder %s864_s8, %s865_s17  ;;  %p871_p9 = scmp.lt.s32.totalorder %s869_s11, %s865_s17 }
  0x3e   : > { %418 = vmatpush.msra.mxu1 %v383_v9  ;;  %684 = vmatpush.msra.mxu3 %v383_v9 }
  0x3f   : > { %p867_p4 = pnand %p866_p1, %p1023_p3  ;;  %p872_p2 = por %p871_p9, %p870_p11 }
  0x41   : > { %p868_p8 = pneg %p867_p4 }
  0x43   : > { %660 = vmatmul.msk.f32.gmra.mxu0 %vm233_vm0, %v226_v4  ;;  %663 = vmatmul.msk.f32.gmra.mxu2 %vm233_vm0, %v229_v5  ;;  %p873_p10 = pnand %p872_p2, %p868_p8 }
  0x4b   : > { %661 = vmatmul.msk.f32.gmra.mxu0 %vm233_vm0, %v227_v6  ;;  %664 = vmatmul.msk.f32.gmra.mxu2 %vm233_vm0, %v230_v7 }
  0xb8   : > { %v269_v10 = vpop.f32.mrf.mxu0 }
  0xb9   : > { %287 = vxpose.xlu1.b32.start [1/2] (short) (narrow) %v269_v10, 16 }
  0xbe   : > { %v278_v11 = vpop.f32.mrf.mxu2 }
  0xc0   : > { %v272_v12 = vpop.f32.mrf.mxu0 }
  0xc1   : > { %288 = vxpose.xlu1.b32.end [2/2] (short) (narrow) %v272_v12, 16 }
  0xc6   : > { %v281_v13 = vpop.f32.mrf.mxu2 }
  0xc7   : > { %351 = vxpose.xlu2.b32.start [1/2] (short) (narrow) %v281_v13, 16 }
  0xc8   : > { %v275_v14 = vpop.f32.mrf.mxu0 }
  0xc9   : > { %319 = vxpose.xlu0.b32.start [1/2] (short) (narrow) %v275_v14, 16 }
  0xce   : > { %v284_v15 = vpop.f32.mrf.mxu2 }
  0xcf   : > { %352 = vxpose.xlu2.b32.end [2/2] (short) (narrow) %v284_v15, 16 }
  0xd1   : > { %320 = vxpose.xlu0.b32.end [2/2] (short) (narrow) %v278_v11, 16 }
 0x15d   : > { %v303_v16 = vpop.trf.xlu1 }
 0x15e   : > { %665 = vmatmul.msk.f32.vlgmr.msra.gmra.mxu1 %vm233_vm0, %v303_v16 }
 0x160   : > { %v367_v20 = vpop.trf.xlu2 }
 0x165   : > { %v304_v17 = vpop.trf.xlu1 }
 0x166   : > { %666 = vmatmul.msk.f32.gmra.mxu1 %vm233_vm0, %v304_v17 }
 0x168   : > { %v368_v21 = vpop.trf.xlu2 }
 0x16d   : > { %v335_v18 = vpop.trf.xlu0 }
 0x16e   : > { %667 = vmatmul.msk.f32.gmra.mxu1 %vm233_vm0, %v335_v18 }
 0x175   : > { %v336_v19 = vpop.trf.xlu0 }
 0x176   : > { %668 = vmatmul.msk.f32.vlgmr.msra.gmra.mxu3 %vm233_vm0, %v336_v19 }
 0x17e   : > { %669 = vmatmul.msk.f32.gmra.mxu3 %vm233_vm0, %v367_v20 }
 0x186   : > { %670 = vmatmul.msk.f32.gmra.mxu3 %vm233_vm0, %v368_v21 }
 0x1db   : > { %v420_v22 = vpop.f32.mrf.mxu1 }
 0x1dc   : > { %438 = vxpose.xlu0.b32.start [1/2] (short) (narrow) %v420_v22, 16 }
 0x1e3   : > { %v423_v23 = vpop.f32.mrf.mxu1 }
 0x1e4   : > { %439 = vxpose.xlu0.b32.end [2/2] (short) (narrow) %v423_v23, 16 }
 0x1eb   : > { %v426_v24 = vpop.f32.mrf.mxu1 }
 0x1ec   : > { %470 = vxpose.xlu1.b32.start [1/2] (short) (narrow) %v426_v24, 16 }
 0x1f9   : > { %v429_v25 = vpop.f32.mrf.mxu3 }
 0x1fa   : > { %471 = vxpose.xlu1.b32.end [2/2] (short) (narrow) %v429_v25, 16 }
 0x201   : > { %v432_v26 = vpop.f32.mrf.mxu3 }
 0x202   : > { %502 = vxpose.xlu2.b32.start [1/2] (short) (narrow) %v432_v26, 16 }
 0x209   : > { %v435_v27 = vpop.f32.mrf.mxu3 }
 0x20a   : > { %503 = vxpose.xlu2.b32.end [2/2] (short) (narrow) %v435_v27, 16 }
 0x280   : > { %v454_v28 = vpop.trf.xlu0 }
 0x281   : > { %534 = vst.msk [vmem:[%s222_s18] sm:$0xff] %vm233_vm0, %v454_v28 }
 0x288   : > { %v455_v29 = vpop.trf.xlu0 }
 0x289   : > { %535 = vst.msk [vmem:[%s222_s18 + $0x8] sm:$0xff] %vm233_vm0, %v455_v29 }
 0x296   : > { %v486_v30 = vpop.trf.xlu1 }
 0x297   : > { %536 = vst.msk [vmem:[%s222_s18 + $0x10] sm:$0xff] %vm233_vm0, %v486_v30 }
 0x29b   : > { %v518_v31 = vpop.trf.xlu2 }
 0x29c   : > { %538 = vst.msk [vmem:[%s222_s18 + $0x20] sm:$0xff] %vm233_vm0, %v518_v31 }
 0x29e   : > { %v487_v32 = vpop.trf.xlu1 }
 0x29f   : > { %537 = vst.msk [vmem:[%s222_s18 + $0x18] sm:$0xff] %vm233_vm0, %v487_v32 }
 0x2a3   : > { %v519_v33 = vpop.trf.xlu2 }
 0x2a4   : > { %539 = vst.msk [vmem:[%s222_s18 + $0x28] sm:$0xff] %vm233_vm0, %v519_v33 }
 0x2a5   : > { %876 = shalt.err (!%p873_p10)
}
 0x2a6   : > { %s929_s30 = smov 128   ;;  %s930_s23 = smov 8  }
 0x2a7   : > { %697 = dma.vmem_to_hbm [thread:$0]  (%p1023_p3), %s555_s5, 768, %s557_s7, %s541_s16, %s929_s30, %s929_s30, %s930_s23  }
 0x2a8 PF: > { %s571_s21 = sand.u32 1, %s911_s12   ;;  %p1141_p12 = scmp.ge.s32.totalorder %s923_s15, 2 }
 0x2a9   : > { %s572_s25 = scalar_lea.sflag [#allocation4], %s571_s21 }
 0x2aa   : > { %p711_p13 = pnand %p1141_p12, %p986_p6 }
 0x2ac   : > { %p712_p0 = pneg %p711_p13 }
 0x2ae   : > { %906 = dma.done.wait (%p712_p0), %s572_s25, 768  }
 0x2af   : > { %908 = vsyncadd (%p712_p0), %s572_s25, 4294966528  ;;  %p15_p5 = scmp.ge.s32.totalorder %s1013_s6, 4   ;;  %s1142_s12 = smov %s915_s13 }
 0x2b0   : > { %s1143_s13 = smov %s919_s14  ;;  %s1144_s14 = smov %s1029_s10 }
 0x2b1   : > { %s1145_s15 = smov %s1013_s6  ;;  %17 = sbr.rel (!%p15_p5) target bundleno = 5 (0x5), region = 84 }
 0x2b6   :  { %578 = vsyncpa [#allocation3], 1 }
 0x2b7   :  { %580 = vsyncpa [#allocation3 + $0x1], 1 }
 0x2b8   :  { %581 = vsyncpa [#allocation6], 1 }
 0x2b9   :  { %582 = vsyncpa [#allocation4], 1 }
 0x2ba   :  { %584 = vsyncpa [#allocation4 + $0x1], 1 }

// kernel: tpu_custom_call.1
= control target key start
LH: loop header
LB: loop body
LE: loop exit
PB: predicated region body
PF: predicated region fallthrough
CT: control target
= control target key end

     0   :  { %8 = vsyncpa [#allocation3], 0  ;;  %s1128_s0 = inlined_call_operand.hbm [shape: f32[1,16,16], index: 0, kind: input, shape index: {}]   ;;  %s1129_s1 = inlined_call_operand.hbm [shape: f32[1,16,16], index: 1, kind: input, shape index: {}]   ;;  %s1130_s2 = inlined_call_operand.hbm [shape: f32[6,16,16], index: 2, kind: input, shape index: {}]   ;;  %s1131_s3 = inlined_call_operand.hbm [shape: f32[6,16,16], index: 3, kind: output, shape index: {}]  }
   0x1   :  { %9 = vsyncpa [#allocation6], 0 }
   0x2   :  { %10 = vsyncpa [#allocation4], 0 }
   0x3   :  { %12 = vsyncpa [#allocation4 + $0x1], 0  ;;  %s951_s12 = smov 0   ;;  %s953_s13 = smov 0  }
   0x4   :  { %s955_s14 = smov 0   ;;  %s957_s15 = smov 0  }
   0x5 LB: > { %s972_s16 = sadd.s32 4294967295, %s923_s15   ;;  %s649_s17 = sadd.s32 4294967294, %s923_s15   ;;  %s923_s15 = sphi %s957_s15, %s1145_s15   ;;  %s919_s14 = sphi %s955_s14, %s1144_s14   ;;  %s915_s13 = sphi %s953_s13, %s1143_s13   ;;  %s911_s12 = sphi %s951_s12, %s1142_s12  }
   0x6   : > { %p80_p0 = scmp.ne.s32.totalorder %s915_s13, %s911_s12  ;;  %p81_p1 = scmp.eq.s32.totalorder %s972_s16, 0 }
   0x7   : > { %p104_p2 = scmp.eq.s32.totalorder %s972_s16, 1  ;;  %p110_p3 = scmp.eq.s32.totalorder %s649_s17, 1 }
   0x8   : > { %p981_p4 = por %p81_p1, %p80_p0  ;;  %p650_p5 = scmp.ge.s32.totalorder %s923_s15, 1 }
   0x9   : > { %p986_p6 = por %p110_p3, %p80_p0  ;;  %p117_p7 = scmp.lt.s32.totalorder %s923_s15, 3 }
   0xa   : > { %s128_s22 = sshll.u32 %s1128_s0, 4  ;;  %s925_s24 = smov [#allocation2]   ;;  %s129_s22 = int_to_ptr.hbm [resolvable:$true] %s128_s22 }
   0xb   : > { %p994_p8 = pnand %p650_p5, %p117_p7  ;;  %s130_s25 = sshll.u32 %s925_s24, 4  ;;  %s131_s25 = int_to_ptr.vmem [resolvable:$true] %s130_s25 }
   0xc   : > { %s142_s28 = sshll.u32 %s1129_s1, 4  ;;  %s1132_s29 = smov 128   ;;  %s143_s28 = int_to_ptr.hbm [resolvable:$true] %s142_s28 }
   0xd   : > { %p699_p9 = pneg %p994_p8  ;;  %s1133_s30 = smov 8  }
   0xe   : > { %s928_s4 = smov [#allocation5]   ;;  %s1013_s6 = sadd.s32 1, %s923_s15  }
   0xf   : > { %p700_p10 = pnand %p699_p9, %p81_p1  ;;  %s144_s5 = sshll.u32 %s928_s4, 4  ;;  %s145_s5 = int_to_ptr.vmem [resolvable:$true] %s144_s5 }
  0x10   : > { %s67_s7 = sadd.s32 1, %s919_s14  ;;  %s64_s8 = ssub.s32 %s923_s15, %s1013_s6 }
  0x11   : > { %702 = dma.hbm_to_vmem [thread:$0]  (!%p700_p10), %s129_s22, 256, %s131_s25, [#allocation3], %s1132_s29, %s1132_s29, %s1133_s30  }
  0x12   : > { %705 = dma.hbm_to_vmem [thread:$0]  (!%p700_p10), %s143_s28, 256, %s145_s5, [#allocation6], %s1132_s29, %s1132_s29, %s1133_s30  }
  0x13   : > { %p74_p12 = scmp.ne.s32.totalorder %s919_s14, %s915_s13  ;;  %p65_p13 = scmp.eq.s32.totalorder %s64_s8, 0 }
  0x14   : > { %p75_p0 = scmp.eq.s32.totalorder %s923_s15, 0  ;;  %p716_p5 = scmp.lt.s32.totalorder %s923_s15, 2 }
  0x15   : > { %p1023_p3 = por %p104_p2, %p74_p12  ;;  %s158_s11 = sand.u32 1, %s923_s15  }
  0x16   : > { %s1029_s10 = scalar_select %p65_p13, %s919_s14, %s67_s7  }
  0x17   : > { %p76_p7 = por %p75_p0, %p74_p12  ;;  %s160_s17 = sand.u32 1, %s919_s14  }
  0x18   : > { %s685_s20 = smul.u32 48, %s160_s17  ;;  %s159_s5 = scalar_lea.sflag [#allocation3], %s158_s11 }
  0x19   : > { %p1033_p9 = pnand %p716_p5, %p76_p7  ;;  %s679_s22 = smul.u32 48, %s923_s15 }
  0x1a   : > { %s162_s27 = scalar_lea.vmem [#allocation7], %s685_s20  ;;  %s826_s30 = scalar_lea.hbm %s1130_s2, 96 }
  0x1b   : > { %s168_s26 = scalar_lea.hbm %s1130_s2, %s679_s22  ;;  %s171_s28 = sshll.u32 %s162_s27, 4  ;;  %s172_s28 = int_to_ptr.vmem [resolvable:$true] %s171_s28 }
  0x1c   : > { %s169_s4 = sshll.u32 %s168_s26, 4  ;;  %p823_p10 = pneg %p1033_p9  ;;  %s170_s4 = int_to_ptr.hbm [resolvable:$true] %s169_s4 }
  0x1d   : > { %s819_s7 = sshra.s32 %s170_s4, 4  ;;  %s820_s7 = int_to_ptr.hbm [resolvable:$true] %s819_s7 }
  0x1e   : > { %s821_s8 = scalar_lea.hbm %s820_s7, 48  ;;  %p827_p0 = scmp.lt.s32.totalorder %s820_s7, %s1130_s2 }
  0x1f   : > { %p822_p2 = scmp.ne.s32.totalorder %s820_s7, %s821_s8  ;;  %p828_p5 = scmp.lt.s32.totalorder %s826_s30, %s821_s8 }
  0x21   : > { %p824_p12 = pnand %p823_p10, %p822_p2  ;;  %p829_p7 = por %p828_p5, %p827_p0 }
  0x23   : > { %p825_p13 = pneg %p824_p12 }
  0x25   : > { %p830_p11 = pnand %p829_p7, %p825_p13 }
  0x27   : > { %833 = shalt.err (!%p830_p11)
}
  0x28   : > { %s1139_s11 = smov 8   ;;  %s1140_s20 = smov 128  }
  0x29   : > { %709 = dma.hbm_to_vmem [thread:$0]  (!%p1033_p9), %s170_s4, 768, %s172_s28, %s159_s5, %s1140_s20, %s1140_s20, %s1139_s11  }
  0x2a   : > { %183 = sbr.rel (%p994_p8) target bundleno = 680 (0x2a8), region = 32 }
  0x2f   : > { %894 = dma.done.wait (%p81_p1), [#allocation3], 256  }
  0x30   : > { %896 = vsyncadd (%p81_p1), [#allocation3], 4294967040 }
  0x31   : > { %898 = dma.done.wait (%p81_p1), [#allocation6], 256  }
  0x32   : > { %900 = vsyncadd (%p81_p1), [#allocation6], 4294967040  ;;  %s195_s29 = sand.u32 1, %s972_s16   ;;  %s197_s30 = sand.u32 1, %s915_s13  }
  0x33   : > { %s1068_s23 = smul.u32 48, %s197_s30  ;;  %s196_s21 = scalar_lea.sflag [#allocation3], %s195_s29 }
  0x35   : > { %s199_s25 = scalar_lea.vmem [#allocation7], %s1068_s23 }
  0x36   : > { %902 = dma.done.wait (%p981_p4), %s196_s21, 768  }
  0x37   : > { %904 = vsyncadd (%p981_p4), %s196_s21, 4294966528  ;;  %v232_v0 = vld [vmem:[#allocation5 + $0x8] sm:$0xff]  ;;  %v231_v1 = vld [vmem:[#allocation5] sm:$0xff]  ;;  %vm233_vm0 = vcmask 130048   ;;  %s222_s18 = scalar_lea.vmem [#allocation8], %s1068_s23  ;;  %s680_s26 = smul.u32 48, %s972_s16 }
  0x38   : > { %266 = vmatpush.msra.mxu0 %v232_v0  ;;  %v225_v2 = vld [vmem:[%s199_s25] sm:$0xff]  ;;  %681 = vmatpush.msra.mxu2 %v232_v0  ;;  %v228_v3 = vld [vmem:[%s199_s25 + $0x18] sm:$0xff]  ;;  %v226_v4 = vld [vmem:[%s199_s25 + $0x8] sm:$0xff]  ;;  %s554_s5 = sshll.u32 %s222_s18, 4  ;;  %s541_s16 = scalar_lea.sflag [#allocation4], %s197_s30  ;;  %s555_s5 = int_to_ptr.vmem [resolvable:$true] %s554_s5 }
  0x39   : > { %v229_v5 = vld [vmem:[%s199_s25 + $0x20] sm:$0xff]  ;;  %v227_v6 = vld [vmem:[%s199_s25 + $0x10] sm:$0xff]  ;;  %v230_v7 = vld [vmem:[%s199_s25 + $0x28] sm:$0xff]  ;;  %s553_s4 = scalar_lea.hbm %s1131_s3, %s680_s26  ;;  %s869_s11 = scalar_lea.hbm %s1131_s3, 96 }
  0x3a   : > { %267 = vmatpush.msra.mxu0 %v231_v1  ;;  %682 = vmatpush.msra.mxu2 %v231_v1  ;;  %v384_v8 = vld [vmem:[#allocation2 + $0x8] sm:$0xff]  ;;  %v383_v9 = vld [vmem:[#allocation2] sm:$0xff]  ;;  %s556_s7 = sshll.u32 %s553_s4, 4  ;;  %s557_s7 = int_to_ptr.hbm [resolvable:$true] %s556_s7 }
  0x3b   : > { %659 = vmatmul.msk.f32.vlgmr.msra.gmra.mxu0 %vm233_vm0, %v225_v2  ;;  %662 = vmatmul.msk.f32.vlgmr.msra.gmra.mxu2 %vm233_vm0, %v228_v3  ;;  %s863_s8 = sshra.s32 %s557_s7, 4  ;;  %s864_s8 = int_to_ptr.hbm [resolvable:$true] %s863_s8 }
  0x3c   : > { %417 = vmatpush.msra.mxu1 %v384_v8  ;;  %683 = vmatpush.msra.mxu3 %v384_v8  ;;  %s865_s17 = scalar_lea.hbm %s864_s8, 48  ;;  %p870_p11 = scmp.lt.s32.totalorder %s864_s8, %s1131_s3 }
  0x3d   : > { %p866_p1 = scmp.ne.s32.totalorder %s864_s8, %s865_s17  ;;  %p871_p9 = scmp.lt.s32.totalorder %s869_s11, %s865_s17 }
  0x3e   : > { %418 = vmatpush.msra.mxu1 %v383_v9  ;;  %684 = vmatpush.msra.mxu3 %v383_v9 }
  0x3f   : > { %p867_p4 = pnand %p866_p1, %p1023_p3  ;;  %p872_p2 = por %p871_p9, %p870_p11 }
  0x41   : > { %p868_p8 = pneg %p867_p4 }
  0x43   : > { %660 = vmatmul.msk.f32.gmra.mxu0 %vm233_vm0, %v226_v4  ;;  %663 = vmatmul.msk.f32.gmra.mxu2 %vm233_vm0, %v229_v5  ;;  %p873_p10 = pnand %p872_p2, %p868_p8 }
  0x4b   : > { %661 = vmatmul.msk.f32.gmra.mxu0 %vm233_vm0, %v227_v6  ;;  %664 = vmatmul.msk.f32.gmra.mxu2 %vm233_vm0, %v230_v7 }
  0xb8   : > { %v269_v10 = vpop.f32.mrf.mxu0 }
  0xb9   : > { %287 = vxpose.xlu1.b32.start [1/2] (short) (narrow) %v269_v10, 16 }
  0xbe   : > { %v278_v11 = vpop.f32.mrf.mxu2 }
  0xc0   : > { %v272_v12 = vpop.f32.mrf.mxu0 }
  0xc1   : > { %288 = vxpose.xlu1.b32.end [2/2] (short) (narrow) %v272_v12, 16 }
  0xc6   : > { %v281_v13 = vpop.f32.mrf.mxu2 }
  0xc7   : > { %351 = vxpose.xlu2.b32.start [1/2] (short) (narrow) %v281_v13, 16 }
  0xc8   : > { %v275_v14 = vpop.f32.mrf.mxu0 }
  0xc9   : > { %319 = vxpose.xlu0.b32.start [1/2] (short) (narrow) %v275_v14, 16 }
  0xce   : > { %v284_v15 = vpop.f32.mrf.mxu2 }
  0xcf   : > { %352 = vxpose.xlu2.b32.end [2/2] (short) (narrow) %v284_v15, 16 }
  0xd1   : > { %320 = vxpose.xlu0.b32.end [2/2] (short) (narrow) %v278_v11, 16 }
 0x15d   : > { %v303_v16 = vpop.trf.xlu1 }
 0x15e   : > { %665 = vmatmul.msk.f32.vlgmr.msra.gmra.mxu1 %vm233_vm0, %v303_v16 }
 0x160   : > { %v367_v20 = vpop.trf.xlu2 }
 0x165   : > { %v304_v17 = vpop.trf.xlu1 }
 0x166   : > { %666 = vmatmul.msk.f32.gmra.mxu1 %vm233_vm0, %v304_v17 }
 0x168   : > { %v368_v21 = vpop.trf.xlu2 }
 0x16d   : > { %v335_v18 = vpop.trf.xlu0 }
 0x16e   : > { %667 = vmatmul.msk.f32.gmra.mxu1 %vm233_vm0, %v335_v18 }
 0x175   : > { %v336_v19 = vpop.trf.xlu0 }
 0x176   : > { %668 = vmatmul.msk.f32.vlgmr.msra.gmra.mxu3 %vm233_vm0, %v336_v19 }
 0x17e   : > { %669 = vmatmul.msk.f32.gmra.mxu3 %vm233_vm0, %v367_v20 }
 0x186   : > { %670 = vmatmul.msk.f32.gmra.mxu3 %vm233_vm0, %v368_v21 }
 0x1db   : > { %v420_v22 = vpop.f32.mrf.mxu1 }
 0x1dc   : > { %438 = vxpose.xlu0.b32.start [1/2] (short) (narrow) %v420_v22, 16 }
 0x1e3   : > { %v423_v23 = vpop.f32.mrf.mxu1 }
 0x1e4   : > { %439 = vxpose.xlu0.b32.end [2/2] (short) (narrow) %v423_v23, 16 }
 0x1eb   : > { %v426_v24 = vpop.f32.mrf.mxu1 }
 0x1ec   : > { %470 = vxpose.xlu1.b32.start [1/2] (short) (narrow) %v426_v24, 16 }
 0x1f9   : > { %v429_v25 = vpop.f32.mrf.mxu3 }
 0x1fa   : > { %471 = vxpose.xlu1.b32.end [2/2] (short) (narrow) %v429_v25, 16 }
 0x201   : > { %v432_v26 = vpop.f32.mrf.mxu3 }
 0x202   : > { %502 = vxpose.xlu2.b32.start [1/2] (short) (narrow) %v432_v26, 16 }
 0x209   : > { %v435_v27 = vpop.f32.mrf.mxu3 }
 0x20a   : > { %503 = vxpose.xlu2.b32.end [2/2] (short) (narrow) %v435_v27, 16 }
 0x280   : > { %v454_v28 = vpop.trf.xlu0 }
 0x281   : > { %534 = vst.msk [vmem:[%s222_s18] sm:$0xff] %vm233_vm0, %v454_v28 }
 0x288   : > { %v455_v29 = vpop.trf.xlu0 }
 0x289   : > { %535 = vst.msk [vmem:[%s222_s18 + $0x8] sm:$0xff] %vm233_vm0, %v455_v29 }
 0x296   : > { %v486_v30 = vpop.trf.xlu1 }
 0x297   : > { %536 = vst.msk [vmem:[%s222_s18 + $0x10] sm:$0xff] %vm233_vm0, %v486_v30 }
 0x29b   : > { %v518_v31 = vpop.trf.xlu2 }
 0x29c   : > { %538 = vst.msk [vmem:[%s222_s18 + $0x20] sm:$0xff] %vm233_vm0, %v518_v31 }
 0x29e   : > { %v487_v32 = vpop.trf.xlu1 }
 0x29f   : > { %537 = vst.msk [vmem:[%s222_s18 + $0x18] sm:$0xff] %vm233_vm0, %v487_v32 }
 0x2a3   : > { %v519_v33 = vpop.trf.xlu2 }
 0x2a4   : > { %539 = vst.msk [vmem:[%s222_s18 + $0x28] sm:$0xff] %vm233_vm0, %v519_v33 }
 0x2a5   : > { %876 = shalt.err (!%p873_p10)
}
 0x2a6   : > { %s929_s30 = smov 128   ;;  %s930_s23 = smov 8  }
 0x2a7   : > { %697 = dma.vmem_to_hbm [thread:$0]  (%p1023_p3), %s555_s5, 768, %s557_s7, %s541_s16, %s929_s30, %s929_s30, %s930_s23  }
 0x2a8 PF: > { %s571_s21 = sand.u32 1, %s911_s12   ;;  %p1141_p12 = scmp.ge.s32.totalorder %s923_s15, 2 }
 0x2a9   : > { %s572_s25 = scalar_lea.sflag [#allocation4], %s571_s21 }
 0x2aa   : > { %p711_p13 = pnand %p1141_p12, %p986_p6 }
 0x2ac   : > { %p712_p0 = pneg %p711_p13 }
 0x2ae   : > { %906 = dma.done.wait (%p712_p0), %s572_s25, 768  }
 0x2af   : > { %908 = vsyncadd (%p712_p0), %s572_s25, 4294966528  ;;  %p15_p5 = scmp.ge.s32.totalorder %s1013_s6, 4   ;;  %s1142_s12 = smov %s915_s13 }
 0x2b0   : > { %s1143_s13 = smov %s919_s14  ;;  %s1144_s14 = smov %s1029_s10 }
 0x2b1   : > { %s1145_s15 = smov %s1013_s6  ;;  %17 = sbr.rel (!%p15_p5) target bundleno = 5 (0x5), region = 84 }
 0x2b6   :  { %578 = vsyncpa [#allocation3], 1 }
 0x2b7   :  { %580 = vsyncpa [#allocation3 + $0x1], 1 }
 0x2b8   :  { %581 = vsyncpa [#allocation6], 1 }
 0x2b9   :  { %582 = vsyncpa [#allocation4], 1 }
 0x2ba   :  { %584 = vsyncpa [#allocation4 + $0x1], 1 }

</bundles_post_ra>
